<compile_context>
chip_gen: v6e
topology: v6e:2x2x1
jax: 0.10.0
libtpu: 0.0.40
codegen_flags: <defaults>
</compile_context>

<pallas_src>
import jax
import jax.numpy as jnp
from jax.experimental import pallas as pl
from jax.experimental.pallas import tpu as pltpu


def adapter_kernel(x_ref, w_ref, o_ref):
    """x_ref: (1, C_in, Ts) NCHW-flattened tile; w_ref: (C_out, C_in); o_ref: (1, C_out, Ts)."""
    x = x_ref[0]                                   # (C_in, Ts) — spatial on the lane axis
    w = w_ref[...]                                 # (C_out, C_in)
    # 1x1 conv == channel-mixing matmul; contraction over C_in, lanes stay dense.
    # TODO(synk): for C_in, C_out < 8 an unrolled VPU FMA form would avoid the
    # padded MXU tile; the kernel is mem-bound so jnp.dot is kept for clarity.
    y = jnp.dot(w, x, preferred_element_type=jnp.float32)   # (C_out, Ts)
    o_ref[0] = y.astype(o_ref.dtype)


def _vmem_limit_bytes():
    """Generation-aware scoped-VMEM limit (v7x: 64 MiB/TC, v5e/v6e: 128 MiB)."""
    cap = None
    try:
        cap = int(getattr(pltpu.get_tpu_info(), "vmem_capacity_bytes", 0)) or None
    except Exception:
        cap = None
    if cap is None:
        cap = 64 * 1024 * 1024              # conservative default: v7x per-TC VMEM
    # ~25% headroom for compiler-internal scratch; never exceed 96 MiB scoped.
    return max(32 * 1024 * 1024, min(int(0.75 * cap), 96 * 1024 * 1024))


def _pick_spatial_tile(s128, c_in, c_out, itemsize, w_bytes, vmem_limit):
    """Return (ts, s_padded): lane-tile size (multiple of 128) and padded spatial extent."""
    per_lane = (c_in + c_out) * itemsize           # (x + out) bytes per lane per step
    # Pipeline footprint ~= 2*(x + out blocks) + single-buffered weight + headroom.
    usable = vmem_limit - w_bytes - 4 * 1024 * 1024
    budget = max(1 * 1024 * 1024, min(usable // 2, vmem_limit // 4))
    max_ts = max(128, (budget // per_lane) // 128 * 128)
    max_ts = min(max_ts, s128)

    # Prefer the largest multiple-of-128 divisor of s128 that fits the budget.
    best = 128
    for cand in range(max_ts, 127, -128):
        if s128 % cand == 0:
            best = cand
            break
    if best >= max_ts // 2 or best >= 2048:
        return best, s128
    # Divisor structure is unfriendly (prime-ish spatial sizes): pad up to a
    # multiple of max_ts instead — < one extra tile of HBM traffic, but keeps
    # long, well-amortized DMA rows and the per-step overhead amortized.
    ts = max_ts
    return ts, ((s128 + ts - 1) // ts) * ts


def parallel_adapter_forward(x_nchw, weights, task, stride=1, compute_dtype=None):
    """x_nchw: (N, C_in, H, W); weights: (nb_tasks, C_out, C_in, 1, 1); task: python int.

    compute_dtype: optional lower-precision dtype (e.g. jnp.bfloat16) for the
    kernel's inputs/outputs (accumulation stays f32).  The op is HBM-BW bound,
    so this is a near-2x win, but it is numerics-visible; default keeps dtype.
    """
    w = weights[task, :, :, 0, 0]                  # (C_out, C_in) — host-side task select
    if stride != 1:
        # 1x1 conv with stride == spatial subsampling (cheap strided slice).
        x_nchw = x_nchw[:, :, ::stride, ::stride]

    if compute_dtype is not None:
        x_nchw = x_nchw.astype(compute_dtype)
        w = w.astype(compute_dtype)

    N, C_in, H, W = x_nchw.shape
    C_out = w.shape[0]
    S = H * W
    itemsize = x_nchw.dtype.itemsize

    # NCHW -> (N, C_in, S): pure reshape, no data movement / no transpose.
    x3 = x_nchw.reshape(N, C_in, S)

    vmem_limit = _vmem_limit_bytes()
    s128 = ((S + 127) // 128) * 128
    w_bytes = C_out * C_in * w.dtype.itemsize
    ts, s_pad = _pick_spatial_tile(s128, C_in, C_out, itemsize, w_bytes, vmem_limit)
    if s_pad != S:
        x3 = jnp.pad(x3, ((0, 0), (0, 0), (0, s_pad - S)))

    # Spatial tiles lead the grid: balanced 2-TensorCore split on v7x even for
    # N == 1 or 2; no effect on v5e/v6e (single TC).
    grid = (s_pad // ts, N)

    cost = pl.CostEstimate(
        flops=2 * N * S * C_in * C_out,
        transcendentals=0,
        bytes_accessed=N * S * (C_in + C_out) * itemsize + w_bytes,
    )

    def _call(single_buffered_weight):
        w_kwargs = {}
        if single_buffered_weight:
            # Constant block index -> weight never re-DMA'd; one buffer frees
            # VMEM for larger spatial tiles (matters under v7x's 64 MiB).
            w_kwargs = dict(pipeline_mode=pl.Buffered(1))
        return pl.pallas_call(
            adapter_kernel,
            out_shape=jax.ShapeDtypeStruct((N, C_out, s_pad), x3.dtype),
            grid_spec=pltpu.PrefetchScalarGridSpec(
                num_scalar_prefetch=0,
                grid=grid,
                in_specs=[
                    # (1, C_in, ts): C_in equals the full array dim, ts is a
                    # multiple of 128 -> satisfies the (8, 128) block rule.
                    pl.BlockSpec((1, C_in, ts), lambda s, n: (n, 0, s)),
                    pl.BlockSpec((C_out, C_in), lambda s, n: (0, 0), **w_kwargs),
                ],
                out_specs=pl.BlockSpec((1, C_out, ts), lambda s, n: (n, 0, s)),
            ),
            compiler_params=pltpu.CompilerParams(
                # No cross-step reduction: both axes independent -> megacore.
                dimension_semantics=("parallel", "parallel"),
                vmem_limit_bytes=vmem_limit,
            ),
            cost_estimate=cost,
        )(x3, w)

    try:
        out3 = _call(True)
    except Exception:
        # pipeline_mode / Buffered(1) unsupported on this JAX version: fall
        # back to the default double-buffered weight (identical semantics).
        out3 = _call(False)

    if s_pad != S:
        out3 = out3[:, :, :S]
    return out3.reshape(N, C_out, H, W)


def reference_forward(x_nchw, weights, task, stride=1):
    """Pure-JAX reference: bias-free 1x1 conv of the selected task in NCHW."""
    w = weights[task, :, :, 0, 0]                  # (C_out, C_in)
    xs = x_nchw[:, :, ::stride, ::stride] if stride != 1 else x_nchw
    return jnp.einsum("oc,nchw->nohw", w, xs.astype(jnp.float32)).astype(x_nchw.dtype)


if __name__ == "__main__":
    key = jax.random.PRNGKey(0)
    kx, kw, kx2 = jax.random.split(key, 3)

    # Small shapes consistent with the module: batch=2, in_planes=planes=4,
    # spatial=16x16, two tasks, stride=1 (the module's default).
    N, C_in, C_out, H, W = 2, 4, 4, 16, 16
    nb_tasks, task = 2, 1

    x = jax.random.normal(kx, (N, C_in, H, W), dtype=jnp.float32)
    # Deterministic synthetic parameters (stand-in for kaiming-uniform init),
    # one bias-free 1x1 conv weight per task (bias=False in conv1x1_fonc).
    weights = 0.1 * jax.random.normal(kw, (nb_tasks, C_out, C_in, 1, 1), dtype=jnp.float32)

    y = jax.block_until_ready(parallel_adapter_forward(x, weights, task))
    y_ref = reference_forward(x, weights, task)
    assert y.shape == (N, C_out, H, W)
    assert jnp.allclose(y, y_ref, atol=1e-4, rtol=1e-4), "mismatch vs reference"

    # Exercise the non-128-divisible spatial path (wrapper-side zero padding).
    x2 = jax.random.normal(kx2, (N, C_in, 9, 9), dtype=jnp.float32)
    y2 = jax.block_until_ready(parallel_adapter_forward(x2, weights, task))
    y2_ref = reference_forward(x2, weights, task)
    assert y2.shape == (N, C_out, 9, 9)
    assert jnp.allclose(y2, y2_ref, atol=1e-4, rtol=1e-4), "mismatch vs reference (padded)"

    print("KERNEL_OK")
</pallas_src>

<mosaic_0001>
module attributes {stable_mosaic.version = 11 : i64} {
  func.func @adapter_kernel(%arg0: i32, %arg1: i32, %arg2: memref<1x4x256xf32, #tpu.memory_space<vmem>>, %arg3: memref<4x4xf32, #tpu.memory_space<vmem>>, %arg4: memref<1x4x256xf32, #tpu.memory_space<vmem>>) attributes {dimension_semantics = [#tpu.dimension_semantics<parallel>, #tpu.dimension_semantics<parallel>], iteration_bounds = array<i64: 1, 2>, scalar_prefetch = 0 : i64, scratch_operands = 0 : i64, tpu.core_type = #tpu.core_type<tc>, window_params = [{transform_indices = @transform_0, window_bounds = array<i64: 1, 4, 256>}, {pipeline_mode = #tpu.pipeline_mode<synchronous>, transform_indices = @transform_1, window_bounds = array<i64: 4, 4>}, {transform_indices = @transform_2, window_bounds = array<i64: 1, 4, 256>}]} {
    %c0 = arith.constant 0 : index
    %c0_0 = arith.constant 0 : index
    %c0_1 = arith.constant 0 : index
    %0 = vector.load %arg2[%c0, %c0_0, %c0_1] : memref<1x4x256xf32, #tpu.memory_space<vmem>>, vector<1x4x256xf32>
    %1 = vector.shape_cast %0 : vector<1x4x256xf32> to vector<4x256xf32>
    %c0_2 = arith.constant 0 : index
    %c0_3 = arith.constant 0 : index
    %2 = vector.load %arg3[%c0_2, %c0_3] : memref<4x4xf32, #tpu.memory_space<vmem>>, vector<4x4xf32>
    %cst = arith.constant dense<0.000000e+00> : vector<4x256xf32>
    %3 = tpu.matmul %2, %1, %cst {dimension_numbers = #tpu.dot_dimension_numbers<[1], [0], [0], [1], [0, 0, 1, 1], [], []>} : vector<4x4xf32>, vector<4x256xf32>, vector<4x256xf32> -> vector<4x256xf32>
    %c0_4 = arith.constant 0 : index
    %c0_5 = arith.constant 0 : index
    %c0_6 = arith.constant 0 : index
    %4 = vector.load %arg4[%c0_4, %c0_5, %c0_6] : memref<1x4x256xf32, #tpu.memory_space<vmem>>, vector<1x4x256xf32>
    %5 = vector.shape_cast %4 : vector<1x4x256xf32> to vector<4x256xf32>
    %6 = vector.shape_cast %3 : vector<4x256xf32> to vector<1x4x256xf32>
    tpu.vector_store %arg4[%c0_4, %c0_5, %c0_6], %6 {strides = array<i32>} : memref<1x4x256xf32, #tpu.memory_space<vmem>>, vector<1x4x256xf32>,
    return
  }
  func.func @transform_0(%arg0: i32, %arg1: i32) -> (i32, i32, i32) {
    %c0_i32 = arith.constant 0 : i32
    %c0_i32_0 = arith.constant 0 : i32
    return %arg1, %c0_i32, %arg0 : i32, i32, i32
  }
  func.func @transform_1(%arg0: i32, %arg1: i32) -> (i32, i32) {
    %c0_i32 = arith.constant 0 : i32
    %c0_i32_0 = arith.constant 0 : i32
    %c0_i32_1 = arith.constant 0 : i32
    return %c0_i32, %c0_i32_0 : i32, i32
  }
  func.func @transform_2(%arg0: i32, %arg1: i32) -> (i32, i32, i32) {
    %c0_i32 = arith.constant 0 : i32
    %c0_i32_0 = arith.constant 0 : i32
    return %arg1, %c0_i32, %arg0 : i32, i32, i32
  }
}

module attributes {stable_mosaic.version = 11 : i64} {
  func.func @adapter_kernel(%arg0: i32, %arg1: i32, %arg2: memref<1x4x256xf32, #tpu.memory_space<vmem>>, %arg3: memref<4x4xf32, #tpu.memory_space<vmem>>, %arg4: memref<1x4x256xf32, #tpu.memory_space<vmem>>) attributes {dimension_semantics = [#tpu.dimension_semantics<parallel>, #tpu.dimension_semantics<parallel>], iteration_bounds = array<i64: 1, 2>, scalar_prefetch = 0 : i64, scratch_operands = 0 : i64, tpu.core_type = #tpu.core_type<tc>, window_params = [{transform_indices = @transform_0, window_bounds = array<i64: 1, 4, 256>}, {pipeline_mode = #tpu.pipeline_mode<synchronous>, transform_indices = @transform_1, window_bounds = array<i64: 4, 4>}, {transform_indices = @transform_2, window_bounds = array<i64: 1, 4, 256>}]} {
    %c0 = arith.constant 0 : index
    %c0_0 = arith.constant 0 : index
    %c0_1 = arith.constant 0 : index
    %0 = vector.load %arg2[%c0, %c0_0, %c0_1] : memref<1x4x256xf32, #tpu.memory_space<vmem>>, vector<1x4x256xf32>
    %1 = vector.shape_cast %0 : vector<1x4x256xf32> to vector<4x256xf32>
    %c0_2 = arith.constant 0 : index
    %c0_3 = arith.constant 0 : index
    %2 = vector.load %arg3[%c0_2, %c0_3] : memref<4x4xf32, #tpu.memory_space<vmem>>, vector<4x4xf32>
    %cst = arith.constant dense<0.000000e+00> : vector<4x256xf32>
    %3 = tpu.matmul %2, %1, %cst {dimension_numbers = #tpu.dot_dimension_numbers<[1], [0], [0], [1], [0, 0, 1, 1], [], []>} : vector<4x4xf32>, vector<4x256xf32>, vector<4x256xf32> -> vector<4x256xf32>
    %c0_4 = arith.constant 0 : index
    %c0_5 = arith.constant 0 : index
    %c0_6 = arith.constant 0 : index
    %4 = vector.load %arg4[%c0_4, %c0_5, %c0_6] : memref<1x4x256xf32, #tpu.memory_space<vmem>>, vector<1x4x256xf32>
    %5 = vector.shape_cast %4 : vector<1x4x256xf32> to vector<4x256xf32>
    %6 = vector.shape_cast %3 : vector<4x256xf32> to vector<1x4x256xf32>
    tpu.vector_store %arg4[%c0_4, %c0_5, %c0_6], %6 {strides = array<i32>} : memref<1x4x256xf32, #tpu.memory_space<vmem>>, vector<1x4x256xf32>,
    return
  }
  func.func @transform_0(%arg0: i32, %arg1: i32) -> (i32, i32, i32) {
    %c0_i32 = arith.constant 0 : i32
    %c0_i32_0 = arith.constant 0 : i32
    return %arg1, %c0_i32, %arg0 : i32, i32, i32
  }
  func.func @transform_1(%arg0: i32, %arg1: i32) -> (i32, i32) {
    %c0_i32 = arith.constant 0 : i32
    %c0_i32_0 = arith.constant 0 : i32
    %c0_i32_1 = arith.constant 0 : i32
    return %c0_i32, %c0_i32_0 : i32, i32
  }
  func.func @transform_2(%arg0: i32, %arg1: i32) -> (i32, i32, i32) {
    %c0_i32 = arith.constant 0 : i32
    %c0_i32_0 = arith.constant 0 : i32
    return %arg1, %c0_i32, %arg0 : i32, i32, i32
  }
}

</mosaic_0001>

<bundles_post_ra>
// kernel: tpu_custom_call.1
= control target key start
LH: loop header
LB: loop body
LE: loop exit
PB: predicated region body
PF: predicated region fallthrough
CT: control target
= control target key end

     0   :  { %7 = vsyncpa [#allocation3], 0  ;;  %s810_s0 = inlined_call_operand.hbm [shape: f32[2,4,256], index: 0, kind: input, shape index: {}]   ;;  %s811_s1 = inlined_call_operand.hbm [shape: f32[4,4], index: 1, kind: input, shape index: {}]   ;;  %s812_s2 = inlined_call_operand.hbm [shape: f32[2,4,256], index: 2, kind: output, shape index: {}]  }
   0x1   :  { %9 = vsyncpa [#allocation3 + $0x1], 0 }
   0x2   :  { %10 = vsyncpa [#allocation6], 0 }
   0x3   :  { %11 = vsyncpa [#allocation4], 0 }
   0x4   :  { %13 = vsyncpa [#allocation4 + $0x1], 0  ;;  %s649_s9 = smov 0   ;;  %s651_s10 = smov 0  }
   0x5   :  { %s653_s11 = smov 0   ;;  %s655_s12 = smov 0  }
   0x6   :  { %s657_s13 = smov 0   ;;  %s659_s14 = smov 0  }
   0x7 LB: > { %s393_s15 = sadd.s32 4294967295, %s628_s14   ;;  %s394_s16 = sadd.s32 4294967294, %s628_s14   ;;  %s628_s14 = sphi %s659_s14, %s19_s14   ;;  %s624_s13 = sphi %s657_s13, %s829_s13   ;;  %s620_s12 = sphi %s655_s12, %s828_s12   ;;  %s616_s11 = sphi %s653_s11, %s827_s11   ;;  %s612_s10 = sphi %s651_s10, %s826_s10   ;;  %s608_s9 = sphi %s649_s9, %s825_s9  }
   0x8   : > { %p53_p0 = scmp.ne.s32.totalorder %s612_s10, %s608_s9  ;;  %p683_p1 = scmp.eq.s32.totalorder %s393_s15, 0 }
   0x9   : > { %p687_p2 = scmp.eq.s32.totalorder %s393_s15, 1  ;;  %p106_p3 = scmp.eq.s32.totalorder %s394_s16, 1 }
   0xa   : > { %p693_p4 = por %p683_p1, %p53_p0  ;;  %p395_p5 = scmp.ge.s32.totalorder %s628_s14, 1 }
   0xb   : > { %p698_p6 = por %p106_p3, %p53_p0  ;;  %p113_p7 = scmp.lt.s32.totalorder %s628_s14, 3 }
   0xc   : > { %s816_s19 = scalar_select %p693_p4, 1, 0 }
   0xd   : > { %s817_s20 = scalar_select %p698_p6, 1, 0 }
   0xe   : > { %p703_p8 = pnand %p395_p5, %p113_p7  ;;  %s630_s22 = smov [#allocation5]  }
   0xf   : > { %s126_s23 = sshll.u32 %s630_s22, 4  ;;  %s28_s25 = sadd.s32 1, %s624_s13  ;;  %s127_s23 = int_to_ptr.vmem [resolvable:$true] %s126_s23 }
  0x10   : > { %p423_p10 = pneg %p703_p8  ;;  %s40_s26 = sadd.s32 1, %s616_s11 }
  0x11   : > { %p29_p12 = scmp.ge.s32.totalorder %s28_s25, 2  ;;  %s501_s27 = scalar_lea.vmem %s127_s23, 64 }
  0x12   : > { %p712_p11 = pnand %p423_p10, %p683_p1  ;;  %p502_p0 = scmp.ne.s32.totalorder %s127_s23, %s501_s27 }
  0x13   : > { %p509_p7 = scmp.lt.s32.totalorder %s127_s23, %s127_s23  ;;  %p510_p6 = scmp.lt.s32.totalorder %s501_s27, %s501_s27 }
  0x14   : > { %p492_p13 = pneg %p712_p11 }
  0x15   : > { %p511_p9 = por %p510_p6, %p509_p7 }
  0x16   : > { %p504_p3 = pnand %p502_p0, %p492_p13 }
  0x18   : > { %p505_p5 = pneg %p504_p3 }
  0x1a   : > { %p512_p4 = pnand %p511_p9, %p505_p5 }
  0x1c   : > { %515 = shalt.err (!%p512_p4)
}
  0x1d   : > { %426 = dma.hbm_to_vmem [thread:$0]  (!%p712_p11), %s811_s1, 64, %s127_s23, [#allocation6]  }
  0x1e   : > { %s831_s25 = smov (%p29_p12, %s28_s25), 0  ;;  %p47_p6 = scmp.ne.s32.totalorder %s616_s11, %s612_s10 }
  0x1f   : > { %p48_p4 = scmp.eq.s32.totalorder %s628_s14, 0  ;;  %s35_s30 = ssub.s32 %s624_s13, %s831_s25 }
  0x20   : > { %p436_p9 = scmp.lt.s32.totalorder %s628_s14, 2  ;;  %p38_p10 = scmp.eq.s32.totalorder %s35_s30, 0 }
  0x21   : > { %p49_p13 = por %p48_p4, %p47_p6  ;;  %p735_p0 = por %p687_p2, %p47_p6 }
  0x22   : > { %s137_s4 = sand.u32 1, %s616_s11   ;;  %s413_s7 = sshll.u32 %s624_s13, 7 }
  0x23   : > { %s741_s5 = scalar_select %p38_p10, %s616_s11, %s40_s26  }
  0x24   : > { %s398_s6 = sshll.u32 %s137_s4, 3  ;;  %s149_s16 = scalar_lea.hbm %s810_s0, %s413_s7 }
  0x25   : > { %s141_s22 = scalar_lea.vmem [#allocation2], %s398_s6  ;;  %p747_p11 = pnand %p436_p9, %p49_p13 }
  0x26   : > { %s151_s23 = sshll.u32 %s141_s22, 4  ;;  %s138_s18 = scalar_lea.sflag [#allocation3], %s137_s4  ;;  %s152_s23 = int_to_ptr.vmem [resolvable:$true] %s151_s23 }
  0x27   : > { %p518_p2 = pneg %p747_p11  ;;  %s529_s27 = scalar_lea.vmem %s152_s23, 128 }
  0x28   : > { %p530_p12 = scmp.ne.s32.totalorder %s152_s23, %s529_s27  ;;  %s631_s26 = smov [#allocation2]  }
  0x29   : > { %s534_s28 = sshll.u32 %s631_s26, 4  ;;  %s535_s28 = int_to_ptr.vmem [resolvable:$false] %s534_s28 }
  0x2a   : > { %p532_p3 = pnand %p530_p12, %p518_p2  ;;  %s536_s29 = scalar_lea.vmem %s535_s28, 256 }
  0x2b   : > { %p537_p7 = scmp.lt.s32.totalorder %s152_s23, %s535_s28  ;;  %p538_p6 = scmp.lt.s32.totalorder %s536_s29, %s529_s27 }
  0x2c   : > { %p533_p5 = pneg %p532_p3 }
  0x2d   : > { %p539_p4 = por %p538_p6, %p537_p7 }
  0x2f   : > { %p540_p10 = pnand %p539_p4, %p533_p5 }
  0x31   : > { %543 = shalt.err (!%p540_p10)
}
  0x32   : > { %430 = dma.hbm_to_vmem [thread:$0]  (!%p747_p11), %s149_s16, 128, %s152_s23, %s138_s18  }
  0x33   : > { %160 = sbr.rel (%p703_p8) target bundleno = 274 (0x112), region = 28  ;;  %s758_s30 = sand.u32 (!%p703_p8), 1, %s612_s10  }
  0x34   : > { %s402_s4 = sshll.u32 (!%p703_p8), %s758_s30, 3  ;;  %s163_s6 = scalar_lea.sflag (!%p703_p8), [#allocation3], %s758_s30 }
  0x35   : > { %s166_s7 = scalar_lea.vmem (!%p703_p8), [#allocation2], %s402_s4  ;;  %p822_p9 = scmp.ne.s32.totalorder (!%p703_p8), %s816_s19, 0 }
  0x38   : > { %595 = dma.done.wait (%p822_p9), %s163_s6, 128  }
  0x39   : > { %597 = vsyncadd (%p822_p9), %s163_s6, 4294967168 }
  0x3a   : > { %599 = dma.done.wait (%p683_p1), [#allocation6], 64  }
  0x3b   : > { %601 = vsyncadd (%p683_p1), [#allocation6], 4294967232  ;;  %v632_v0 = vmov 0.0   ;;  %v193_v1 = vld [vmem:[%s166_s7] sm:$0xff]  ;;  %vm201_vm0 = vcmask 1043456   ;;  %vm197_vm1 = vcmask 31744  }
  0x3c   : > { %270 = vmatprep.mubr.f32.mxu0 %v632_v0  ;;  %v196_v2 = vcombine.high %v193_v1, %v193_v1  ;;  %v194_v3 = vld [vmem:[#allocation5] sm:$0xf]  ;;  %s414_s19 = sshll.u32 %s620_s12, 7  ;;  %s190_s21 = scalar_lea.vmem [#allocation7], %s402_s4 }
  0x3d   : > { %s299_s8 = sshll.u32 %s190_s21, 4  ;;  %s297_s16 = scalar_lea.hbm %s812_s2, %s414_s19  ;;  %s300_s8 = int_to_ptr.vmem [resolvable:$true] %s299_s8 }
  0x3e   : > { %405 = vmatprep.subr.msk.mxu0 %vm201_vm0, %v196_v2  ;;  %s283_s22 = scalar_lea.sflag [#allocation4], %s758_s30  ;;  %s544_s23 = scalar_lea.vmem %s300_s8, 128 }
  0x3f   : > { %406 = vmatpush1.msk.msra.mxu0 %vm201_vm0, %v193_v1  ;;  %p545_p1 = scmp.ne.s32.totalorder %s300_s8, %s544_s23  ;;  %s633_s24 = smov [#allocation7]  }
  0x40   : > { %407 = vmatmul.mubr.msk.f32.vlgmr.msra.gmra.mxu0 %vm197_vm1, %v194_v3  ;;  %s548_s18 = sshll.u32 %s633_s24, 4  ;;  %s549_s18 = int_to_ptr.vmem [resolvable:$false] %s548_s18 }
  0x41   : > { %p546_p8 = pnand %p545_p1, %p735_p0  ;;  %s550_s12 = scalar_lea.vmem %s549_s18, 256 }
  0x42   : > { %p551_p11 = scmp.lt.s32.totalorder %s300_s8, %s549_s18  ;;  %p552_p2 = scmp.lt.s32.totalorder %s550_s12, %s544_s23 }
  0x43   : > { %p547_p13 = pneg %p546_p8 }
  0x44   : > { %p553_p12 = por %p552_p2, %p551_p11 }
  0x46   : > { %p554_p3 = pnand %p553_p12, %p547_p13 }
 0x100   : > { %v272_v4 = vpop.f32.mrf.mxu0 }
 0x102   : > { %v274_v5 = vpop.f32.mrf.mxu0 }
 0x103   : > { %v279_v6 = vcombine.low %v272_v4, %v274_v5 }
 0x105   : > { %281 = vst [vmem:[%s190_s21] sm:$0xff] %v279_v6 }
 0x106   : > { %557 = shalt.err (!%p554_p3)
}
 0x107   : > { %s558_s27 = scalar_lea.hbm %s297_s16, 128  ;;  %s562_s29 = scalar_lea.hbm %s812_s2, 256 }
 0x108   : > { %p559_p5 = scmp.ne.s32.totalorder %s297_s16, %s558_s27  ;;  %p563_p4 = scmp.lt.s32.totalorder %s297_s16, %s812_s2 }
 0x109   : > { %p564_p10 = scmp.lt.s32.totalorder %s562_s29, %s558_s27 }
 0x10a   : > { %p560_p7 = pnand %p559_p5, %p735_p0 }
 0x10b   : > { %p565_p9 = por %p564_p10, %p563_p4 }
 0x10c   : > { %p561_p6 = pneg %p560_p7 }
 0x10e   : > { %p566_p1 = pnand %p565_p9, %p561_p6 }
 0x110   : > { %569 = shalt.err (!%p566_p1)
}
 0x111   : > { %421 = dma.vmem_to_hbm [thread:$0]  (%p735_p0), %s300_s8, 128, %s297_s16, %s283_s22  }
 0x112 PF: > { %s311_s6 = sand.u32 1, %s608_s9   ;;  %p823_p8 = scmp.ne.s32.totalorder %s817_s20, 0 }
 0x113   : > { %p824_p13 = scmp.ge.s32.totalorder %s628_s14, 2  ;;  %s312_s7 = scalar_lea.sflag [#allocation4], %s311_s6 }
 0x115   : > { %p432_p11 = pnand %p824_p13, %p823_p8 }
 0x117   : > { %p433_p2 = pneg %p432_p11 }
 0x119   : > { %603 = dma.done.wait (%p433_p2), %s312_s7, 128  }
 0x11a   : > { %605 = vsyncadd (%p433_p2), %s312_s7, 4294967168  ;;  %s19_s14 = sadd.s32 1, %s628_s14   ;;  %s825_s9 = smov %s612_s10 }
 0x11b   : > { %p16_p12 = scmp.ge.s32.totalorder %s19_s14, 4   ;;  %s826_s10 = smov %s616_s11 }
 0x11c   : > { %s827_s11 = smov %s741_s5  ;;  %s828_s12 = smov %s624_s13 }
 0x11d   : > { %s829_s13 = smov %s831_s25  ;;  %18 = sbr.rel (!%p16_p12) target bundleno = 7 (0x7), region = 77 }
 0x122   :  { %317 = vsyncpa [#allocation3], 1 }
 0x123   :  { %319 = vsyncpa [#allocation3 + $0x1], 1 }
 0x124   :  { %320 = vsyncpa [#allocation6], 1 }
 0x125   :  { %321 = vsyncpa [#allocation4], 1 }
 0x126   :  { %323 = vsyncpa [#allocation4 + $0x1], 1 }

// kernel: tpu_custom_call.1
= control target key start
LH: loop header
LB: loop body
LE: loop exit
PB: predicated region body
PF: predicated region fallthrough
CT: control target
= control target key end

     0   :  { %7 = vsyncpa [#allocation3], 0  ;;  %s810_s0 = inlined_call_operand.hbm [shape: f32[2,4,256], index: 0, kind: input, shape index: {}]   ;;  %s811_s1 = inlined_call_operand.hbm [shape: f32[4,4], index: 1, kind: input, shape index: {}]   ;;  %s812_s2 = inlined_call_operand.hbm [shape: f32[2,4,256], index: 2, kind: output, shape index: {}]  }
   0x1   :  { %9 = vsyncpa [#allocation3 + $0x1], 0 }
   0x2   :  { %10 = vsyncpa [#allocation6], 0 }
   0x3   :  { %11 = vsyncpa [#allocation4], 0 }
   0x4   :  { %13 = vsyncpa [#allocation4 + $0x1], 0  ;;  %s649_s9 = smov 0   ;;  %s651_s10 = smov 0  }
   0x5   :  { %s653_s11 = smov 0   ;;  %s655_s12 = smov 0  }
   0x6   :  { %s657_s13 = smov 0   ;;  %s659_s14 = smov 0  }
   0x7 LB: > { %s393_s15 = sadd.s32 4294967295, %s628_s14   ;;  %s394_s16 = sadd.s32 4294967294, %s628_s14   ;;  %s628_s14 = sphi %s659_s14, %s19_s14   ;;  %s624_s13 = sphi %s657_s13, %s829_s13   ;;  %s620_s12 = sphi %s655_s12, %s828_s12   ;;  %s616_s11 = sphi %s653_s11, %s827_s11   ;;  %s612_s10 = sphi %s651_s10, %s826_s10   ;;  %s608_s9 = sphi %s649_s9, %s825_s9  }
   0x8   : > { %p53_p0 = scmp.ne.s32.totalorder %s612_s10, %s608_s9  ;;  %p683_p1 = scmp.eq.s32.totalorder %s393_s15, 0 }
   0x9   : > { %p687_p2 = scmp.eq.s32.totalorder %s393_s15, 1  ;;  %p106_p3 = scmp.eq.s32.totalorder %s394_s16, 1 }
   0xa   : > { %p693_p4 = por %p683_p1, %p53_p0  ;;  %p395_p5 = scmp.ge.s32.totalorder %s628_s14, 1 }
   0xb   : > { %p698_p6 = por %p106_p3, %p53_p0  ;;  %p113_p7 = scmp.lt.s32.totalorder %s628_s14, 3 }
   0xc   : > { %s816_s19 = scalar_select %p693_p4, 1, 0 }
   0xd   : > { %s817_s20 = scalar_select %p698_p6, 1, 0 }
   0xe   : > { %p703_p8 = pnand %p395_p5, %p113_p7  ;;  %s630_s22 = smov [#allocation5]  }
   0xf   : > { %s126_s23 = sshll.u32 %s630_s22, 4  ;;  %s28_s25 = sadd.s32 1, %s624_s13  ;;  %s127_s23 = int_to_ptr.vmem [resolvable:$true] %s126_s23 }
  0x10   : > { %p423_p10 = pneg %p703_p8  ;;  %s40_s26 = sadd.s32 1, %s616_s11 }
  0x11   : > { %p29_p12 = scmp.ge.s32.totalorder %s28_s25, 2  ;;  %s501_s27 = scalar_lea.vmem %s127_s23, 64 }
  0x12   : > { %p712_p11 = pnand %p423_p10, %p683_p1  ;;  %p502_p0 = scmp.ne.s32.totalorder %s127_s23, %s501_s27 }
  0x13   : > { %p509_p7 = scmp.lt.s32.totalorder %s127_s23, %s127_s23  ;;  %p510_p6 = scmp.lt.s32.totalorder %s501_s27, %s501_s27 }
  0x14   : > { %p492_p13 = pneg %p712_p11 }
  0x15   : > { %p511_p9 = por %p510_p6, %p509_p7 }
  0x16   : > { %p504_p3 = pnand %p502_p0, %p492_p13 }
  0x18   : > { %p505_p5 = pneg %p504_p3 }
  0x1a   : > { %p512_p4 = pnand %p511_p9, %p505_p5 }
  0x1c   : > { %515 = shalt.err (!%p512_p4)
}
  0x1d   : > { %426 = dma.hbm_to_vmem [thread:$0]  (!%p712_p11), %s811_s1, 64, %s127_s23, [#allocation6]  }
  0x1e   : > { %s831_s25 = smov (%p29_p12, %s28_s25), 0  ;;  %p47_p6 = scmp.ne.s32.totalorder %s616_s11, %s612_s10 }
  0x1f   : > { %p48_p4 = scmp.eq.s32.totalorder %s628_s14, 0  ;;  %s35_s30 = ssub.s32 %s624_s13, %s831_s25 }
  0x20   : > { %p436_p9 = scmp.lt.s32.totalorder %s628_s14, 2  ;;  %p38_p10 = scmp.eq.s32.totalorder %s35_s30, 0 }
  0x21   : > { %p49_p13 = por %p48_p4, %p47_p6  ;;  %p735_p0 = por %p687_p2, %p47_p6 }
  0x22   : > { %s137_s4 = sand.u32 1, %s616_s11   ;;  %s413_s7 = sshll.u32 %s624_s13, 7 }
  0x23   : > { %s741_s5 = scalar_select %p38_p10, %s616_s11, %s40_s26  }
  0x24   : > { %s398_s6 = sshll.u32 %s137_s4, 3  ;;  %s149_s16 = scalar_lea.hbm %s810_s0, %s413_s7 }
  0x25   : > { %s141_s22 = scalar_lea.vmem [#allocation2], %s398_s6  ;;  %p747_p11 = pnand %p436_p9, %p49_p13 }
  0x26   : > { %s151_s23 = sshll.u32 %s141_s22, 4  ;;  %s138_s18 = scalar_lea.sflag [#allocation3], %s137_s4  ;;  %s152_s23 = int_to_ptr.vmem [resolvable:$true] %s151_s23 }
  0x27   : > { %p518_p2 = pneg %p747_p11  ;;  %s529_s27 = scalar_lea.vmem %s152_s23, 128 }
  0x28   : > { %p530_p12 = scmp.ne.s32.totalorder %s152_s23, %s529_s27  ;;  %s631_s26 = smov [#allocation2]  }
  0x29   : > { %s534_s28 = sshll.u32 %s631_s26, 4  ;;  %s535_s28 = int_to_ptr.vmem [resolvable:$false] %s534_s28 }
  0x2a   : > { %p532_p3 = pnand %p530_p12, %p518_p2  ;;  %s536_s29 = scalar_lea.vmem %s535_s28, 256 }
  0x2b   : > { %p537_p7 = scmp.lt.s32.totalorder %s152_s23, %s535_s28  ;;  %p538_p6 = scmp.lt.s32.totalorder %s536_s29, %s529_s27 }
  0x2c   : > { %p533_p5 = pneg %p532_p3 }
  0x2d   : > { %p539_p4 = por %p538_p6, %p537_p7 }
  0x2f   : > { %p540_p10 = pnand %p539_p4, %p533_p5 }
  0x31   : > { %543 = shalt.err (!%p540_p10)
}
  0x32   : > { %430 = dma.hbm_to_vmem [thread:$0]  (!%p747_p11), %s149_s16, 128, %s152_s23, %s138_s18  }
  0x33   : > { %160 = sbr.rel (%p703_p8) target bundleno = 274 (0x112), region = 28  ;;  %s758_s30 = sand.u32 (!%p703_p8), 1, %s612_s10  }
  0x34   : > { %s402_s4 = sshll.u32 (!%p703_p8), %s758_s30, 3  ;;  %s163_s6 = scalar_lea.sflag (!%p703_p8), [#allocation3], %s758_s30 }
  0x35   : > { %s166_s7 = scalar_lea.vmem (!%p703_p8), [#allocation2], %s402_s4  ;;  %p822_p9 = scmp.ne.s32.totalorder (!%p703_p8), %s816_s19, 0 }
  0x38   : > { %595 = dma.done.wait (%p822_p9), %s163_s6, 128  }
  0x39   : > { %597 = vsyncadd (%p822_p9), %s163_s6, 4294967168 }
  0x3a   : > { %599 = dma.done.wait (%p683_p1), [#allocation6], 64  }
  0x3b   : > { %601 = vsyncadd (%p683_p1), [#allocation6], 4294967232  ;;  %v632_v0 = vmov 0.0   ;;  %v193_v1 = vld [vmem:[%s166_s7] sm:$0xff]  ;;  %vm201_vm0 = vcmask 1043456   ;;  %vm197_vm1 = vcmask 31744  }
  0x3c   : > { %270 = vmatprep.mubr.f32.mxu0 %v632_v0  ;;  %v196_v2 = vcombine.high %v193_v1, %v193_v1  ;;  %v194_v3 = vld [vmem:[#allocation5] sm:$0xf]  ;;  %s414_s19 = sshll.u32 %s620_s12, 7  ;;  %s190_s21 = scalar_lea.vmem [#allocation7], %s402_s4 }
  0x3d   : > { %s299_s8 = sshll.u32 %s190_s21, 4  ;;  %s297_s16 = scalar_lea.hbm %s812_s2, %s414_s19  ;;  %s300_s8 = int_to_ptr.vmem [resolvable:$true] %s299_s8 }
  0x3e   : > { %405 = vmatprep.subr.msk.mxu0 %vm201_vm0, %v196_v2  ;;  %s283_s22 = scalar_lea.sflag [#allocation4], %s758_s30  ;;  %s544_s23 = scalar_lea.vmem %s300_s8, 128 }
  0x3f   : > { %406 = vmatpush1.msk.msra.mxu0 %vm201_vm0, %v193_v1  ;;  %p545_p1 = scmp.ne.s32.totalorder %s300_s8, %s544_s23  ;;  %s633_s24 = smov [#allocation7]  }
  0x40   : > { %407 = vmatmul.mubr.msk.f32.vlgmr.msra.gmra.mxu0 %vm197_vm1, %v194_v3  ;;  %s548_s18 = sshll.u32 %s633_s24, 4  ;;  %s549_s18 = int_to_ptr.vmem [resolvable:$false] %s548_s18 }
  0x41   : > { %p546_p8 = pnand %p545_p1, %p735_p0  ;;  %s550_s12 = scalar_lea.vmem %s549_s18, 256 }
  0x42   : > { %p551_p11 = scmp.lt.s32.totalorder %s300_s8, %s549_s18  ;;  %p552_p2 = scmp.lt.s32.totalorder %s550_s12, %s544_s23 }
  0x43   : > { %p547_p13 = pneg %p546_p8 }
  0x44   : > { %p553_p12 = por %p552_p2, %p551_p11 }
  0x46   : > { %p554_p3 = pnand %p553_p12, %p547_p13 }
 0x100   : > { %v272_v4 = vpop.f32.mrf.mxu0 }
 0x102   : > { %v274_v5 = vpop.f32.mrf.mxu0 }
 0x103   : > { %v279_v6 = vcombine.low %v272_v4, %v274_v5 }
 0x105   : > { %281 = vst [vmem:[%s190_s21] sm:$0xff] %v279_v6 }
 0x106   : > { %557 = shalt.err (!%p554_p3)
}
 0x107   : > { %s558_s27 = scalar_lea.hbm %s297_s16, 128  ;;  %s562_s29 = scalar_lea.hbm %s812_s2, 256 }
 0x108   : > { %p559_p5 = scmp.ne.s32.totalorder %s297_s16, %s558_s27  ;;  %p563_p4 = scmp.lt.s32.totalorder %s297_s16, %s812_s2 }
 0x109   : > { %p564_p10 = scmp.lt.s32.totalorder %s562_s29, %s558_s27 }
 0x10a   : > { %p560_p7 = pnand %p559_p5, %p735_p0 }
 0x10b   : > { %p565_p9 = por %p564_p10, %p563_p4 }
 0x10c   : > { %p561_p6 = pneg %p560_p7 }
 0x10e   : > { %p566_p1 = pnand %p565_p9, %p561_p6 }
 0x110   : > { %569 = shalt.err (!%p566_p1)
}
 0x111   : > { %421 = dma.vmem_to_hbm [thread:$0]  (%p735_p0), %s300_s8, 128, %s297_s16, %s283_s22  }
 0x112 PF: > { %s311_s6 = sand.u32 1, %s608_s9   ;;  %p823_p8 = scmp.ne.s32.totalorder %s817_s20, 0 }
 0x113   : > { %p824_p13 = scmp.ge.s32.totalorder %s628_s14, 2  ;;  %s312_s7 = scalar_lea.sflag [#allocation4], %s311_s6 }
 0x115   : > { %p432_p11 = pnand %p824_p13, %p823_p8 }
 0x117   : > { %p433_p2 = pneg %p432_p11 }
 0x119   : > { %603 = dma.done.wait (%p433_p2), %s312_s7, 128  }
 0x11a   : > { %605 = vsyncadd (%p433_p2), %s312_s7, 4294967168  ;;  %s19_s14 = sadd.s32 1, %s628_s14   ;;  %s825_s9 = smov %s612_s10 }
 0x11b   : > { %p16_p12 = scmp.ge.s32.totalorder %s19_s14, 4   ;;  %s826_s10 = smov %s616_s11 }
 0x11c   : > { %s827_s11 = smov %s741_s5  ;;  %s828_s12 = smov %s624_s13 }
 0x11d   : > { %s829_s13 = smov %s831_s25  ;;  %18 = sbr.rel (!%p16_p12) target bundleno = 7 (0x7), region = 77 }
 0x122   :  { %317 = vsyncpa [#allocation3], 1 }
 0x123   :  { %319 = vsyncpa [#allocation3 + $0x1], 1 }
 0x124   :  { %320 = vsyncpa [#allocation6], 1 }
 0x125   :  { %321 = vsyncpa [#allocation4], 1 }
 0x126   :  { %323 = vsyncpa [#allocation4 + $0x1], 1 }

</bundles_post_ra>
